<compile_context>
chip_gen: v7x
topology: tpu7x:2x2x1
jax: 0.10.0
libtpu: 0.0.40
codegen_flags: <defaults>
</compile_context>

<pallas_src>
import functools

import jax
import jax.numpy as jnp
from jax import lax
from jax.experimental import pallas as pl
from jax.experimental.pallas import tpu as pltpu

# ----------------------------- configuration -------------------------------
BS = 2        # batch size
SEQ = 8       # sequence length
HID = 128     # hidden size (n_embd)
VOCAB = 32    # synthetic vocabulary
PAD_ID = 3    # synthetic tokenizer.unk_token id used as pad


# ------------------------------ Pallas kernel ------------------------------
def reward_kernel(idx_ref, emb_ref, w_ref, vw_ref, out_ref):
    # idx_ref : SMEM (BS,)          int32  scored position per sample (prefetch)
    # emb_ref : VMEM (BS*SEQ, HID)  bf16   batch fused onto the matmul M axis
    # w_ref   : VMEM (HID, HID)     bf16   backbone dense weight (stand-in)
    # vw_ref  : VMEM (1, HID)       f32    v_head weight (Linear(HID, 1), no bias)
    # out_ref : VMEM (BS, 1)        f32    per-sample score
    bs = idx_ref.shape[0]
    m, hid = emb_ref.shape
    seq = m // bs

    # Backbone stand-in: ONE fused bf16 MXU matmul (f32 accumulation); tanh
    # and everything after stays f32 (v5e has no bf16 VPU/EUP).
    h = jnp.tanh(
        jnp.dot(emb_ref[...], w_ref[...], preferred_element_type=jnp.float32)
    )  # (BS*SEQ, HID) f32

    # v_head on every position: VPU multiply + XLU lane-reduce.  No second
    # MXU matmul (the old one-hot selection matmul was pure fill/drain).
    h3 = h.reshape(bs, seq, hid)                 # sublane split only, no relayout
    r = jnp.sum(h3 * vw_ref[...], axis=-1)       # (BS, SEQ) per-position rewards

    # Select rewards[i, idx[i]] with a VPU mask built from the SMEM scalars
    # (first-PAD search already done on the host/wrapper side).
    pos = lax.broadcasted_iota(jnp.int32, (bs, seq), 1)
    b_row = lax.broadcasted_iota(jnp.int32, (bs, seq), 0)
    idx_mat = jnp.zeros((bs, seq), jnp.int32)
    for i in range(bs):                          # bs is small and static
        idx_mat = jnp.where(b_row == i, idx_ref[i], idx_mat)

    # Note: last-dim-1 output is a single masked store here (BS tiny); making
    # it lane-dense would need a sublane->lane transpose, not worth it.
    out_ref[...] = jnp.sum(
        jnp.where(pos == idx_mat, r, 0.0), axis=1, keepdims=True
    )


# -------------------------------- wrapper -----------------------------------
@functools.partial(jax.jit, static_argnames=("scored_rows_only",))
def gpt_reward_forward(input_ids, tok_table, pos_table, w_bf16, v_head_w,
                       scored_rows_only=False):
    """input_ids: (BS, SEQ) int32; tok_table: (VOCAB, HID) f32;
    pos_table: (SEQ, HID) f32; w_bf16: (HID, HID) bf16 (cast hoisted to setup);
    v_head_w: (1, HID) f32  ->  scores (BS,) f32."""
    bs, seq = input_ids.shape
    hid = tok_table.shape[1]

    # First-PAD search (torch: rewards[i, c_ind - 1], c_ind = seq if no PAD;
    # c_ind == 0 wraps to the last token).  Cheap int work, kept in JAX so the
    # kernel only sees the BS scored indices via SMEM scalar prefetch.
    is_pad = input_ids == PAD_ID
    first_pad = jnp.where(jnp.any(is_pad, axis=1), jnp.argmax(is_pad, axis=1), seq)
    idx = ((first_pad - 1) % seq).astype(jnp.int32)          # (BS,)

    if scored_rows_only:
        # Stand-in-only shortcut (placeholder backbone is per-row): feed only
        # the BS scored embedding rows through the matmul.  NOT valid for a
        # real transformer backbone (attention mixes positions).
        tok_rows = jnp.take_along_axis(input_ids, idx[:, None], axis=1)[:, 0]
        emb2d = (tok_table[tok_rows] + pos_table[idx]).astype(jnp.bfloat16)
        idx_k = jnp.zeros((bs,), jnp.int32)                  # row 0 of each "seq"
        m_rows = bs
    else:
        # Fused gather + add + bf16 cast (one XLA fusion under jit: no f32
        # activation materialized in HBM, no separate cast op).
        emb2d = (
            (tok_table[input_ids] + pos_table[None, :, :])
            .astype(jnp.bfloat16)
            .reshape(bs * seq, hid)
        )
        idx_k = idx
        m_rows = bs * seq

    cost = pl.CostEstimate(
        flops=2 * m_rows * hid * hid            # backbone matmul
        + 3 * m_rows * hid,                     # v_head multiply + reduce + select
        transcendentals=m_rows * hid,           # tanh
        bytes_accessed=m_rows * hid * 2         # emb bf16
        + hid * hid * 2                         # weight bf16
        + hid * 4                               # v_head f32
        + bs * 4 + bs * 4,                      # idx + scores
    )

    out = pl.pallas_call(
        reward_kernel,
        out_shape=jax.ShapeDtypeStruct((bs, 1), jnp.float32),
        grid_spec=pltpu.PrefetchScalarGridSpec(
            num_scalar_prefetch=1,
            grid=(1,),
            in_specs=[
                pl.BlockSpec((m_rows, hid), lambda i, idx_ref: (0, 0)),
                pl.BlockSpec((hid, hid), lambda i, idx_ref: (0, 0)),
                pl.BlockSpec((1, hid), lambda i, idx_ref: (0, 0)),
            ],
            out_specs=pl.BlockSpec((bs, 1), lambda i, idx_ref: (0, 0)),
        ),
        compiler_params=pltpu.CompilerParams(
            dimension_semantics=("arbitrary",)
        ),
        cost_estimate=cost,
    )(idx_k, emb2d, w_bf16, v_head_w)
    return out.reshape(bs)


# --------------------------- pure-JAX reference -----------------------------
def reference_forward(input_ids, tok_table, pos_table, w_dense, v_head_w):
    # Same bf16-matmul / f32-accumulate numerics as the kernel.
    bs, seq = input_ids.shape
    emb = (tok_table[input_ids] + pos_table[None, :, :]).astype(jnp.bfloat16)
    h = jnp.tanh(
        jnp.einsum(
            "bsh,hk->bsk",
            emb,
            w_dense.astype(jnp.bfloat16),
            preferred_element_type=jnp.float32,
        )
    )
    rewards = jnp.einsum("bsh,h->bs", h, v_head_w[0])
    scores = []
    for i in range(bs):
        is_pad = input_ids[i] == PAD_ID
        c_ind = jnp.where(jnp.any(is_pad), jnp.argmax(is_pad), seq)
        scores.append(rewards[i, (c_ind - 1) % seq])
    return jnp.stack(scores)


# --------------------------------- main -------------------------------------
if __name__ == "__main__":
    key = jax.random.PRNGKey(0)
    k_tok, k_pos, k_w, k_v = jax.random.split(key, 4)

    # Deterministic parameters (shapes implied by the module's __init__).
    tok_table = jax.random.normal(k_tok, (VOCAB, HID), jnp.float32) * 0.02
    pos_table = jax.random.normal(k_pos, (SEQ, HID), jnp.float32) * 0.02
    w_dense = jax.random.normal(k_w, (HID, HID), jnp.float32) * (1.0 / HID**0.5)
    v_head_w = jax.random.normal(k_v, (1, HID), jnp.float32) * (1.0 / HID**0.5)

    # Hoisted once (not per forward call): backbone weight cast to bf16.
    w_bf16 = w_dense.astype(jnp.bfloat16)

    # input_ids: row 0 has PADs starting at position 3, row 1 has no PAD.
    input_ids = jnp.array(
        [
            [5, 7, 9, PAD_ID, PAD_ID, PAD_ID, PAD_ID, PAD_ID],
            [4, 6, 8, 10, 12, 14, 16, 18],
        ],
        dtype=jnp.int32,
    )

    ref = reference_forward(input_ids, tok_table, pos_table, w_dense, v_head_w)

    # Full-sequence path (valid for a real backbone).
    scores = gpt_reward_forward(input_ids, tok_table, pos_table, w_bf16, v_head_w)
    scores = jax.block_until_ready(scores)
    assert scores.shape == (BS,)
    assert jnp.allclose(scores, ref, atol=5e-4, rtol=1e-3), (scores, ref)

    # Stand-in-only fast path (same kernel, M shrunk to the BS scored rows).
    scores_fast = gpt_reward_forward(
        input_ids, tok_table, pos_table, w_bf16, v_head_w, scored_rows_only=True
    )
    scores_fast = jax.block_until_ready(scores_fast)
    assert jnp.allclose(scores_fast, ref, atol=5e-4, rtol=1e-3), (scores_fast, ref)

    print("KERNEL_OK")
</pallas_src>

<mosaic_0001>
module attributes {stable_mosaic.version = 11 : i64} {
  func.func @reward_kernel(%arg0: i32, %arg1: memref<2xi32, #tpu.memory_space<smem>>, %arg2: memref<16x128xbf16, #tpu.memory_space<vmem>>, %arg3: memref<128x128xbf16, #tpu.memory_space<vmem>>, %arg4: memref<1x128xf32, #tpu.memory_space<vmem>>, %arg5: memref<2x1xf32, #tpu.memory_space<vmem>>) attributes {dimension_semantics = [#tpu.dimension_semantics<arbitrary>], iteration_bounds = array<i64: 1>, scalar_prefetch = 1 : i64, scratch_operands = 0 : i64, tpu.core_type = #tpu.core_type<tc>, window_params = [{pipeline_mode = #tpu.pipeline_mode<synchronous>, transform_indices = @transform_0, window_bounds = array<i64: 16, 128>}, {pipeline_mode = #tpu.pipeline_mode<synchronous>, transform_indices = @transform_1, window_bounds = array<i64: 128, 128>}, {pipeline_mode = #tpu.pipeline_mode<synchronous>, transform_indices = @transform_2, window_bounds = array<i64: 1, 128>}, {pipeline_mode = #tpu.pipeline_mode<synchronous>, transform_indices = @transform_3, window_bounds = array<i64: 2, 1>}]} {
    %c0 = arith.constant 0 : index
    %c0_0 = arith.constant 0 : index
    %0 = vector.load %arg2[%c0, %c0_0] : memref<16x128xbf16, #tpu.memory_space<vmem>>, vector<16x128xbf16>
    %c0_1 = arith.constant 0 : index
    %c0_2 = arith.constant 0 : index
    %1 = vector.load %arg3[%c0_1, %c0_2] : memref<128x128xbf16, #tpu.memory_space<vmem>>, vector<128x128xbf16>
    %cst = arith.constant dense<0.000000e+00> : vector<16x128xf32>
    %2 = tpu.matmul %0, %1, %cst {dimension_numbers = #tpu.dot_dimension_numbers<[1], [0], [0], [1], [0, 0, 1, 1], [], []>} : vector<16x128xbf16>, vector<128x128xbf16>, vector<16x128xf32> -> vector<16x128xf32>
    %3 = math.tanh %2 : vector<16x128xf32>
    %4 = vector.shape_cast %3 : vector<16x128xf32> to vector<2x8x128xf32>
    %c0_3 = arith.constant 0 : index
    %c0_4 = arith.constant 0 : index
    %5 = vector.load %arg4[%c0_3, %c0_4] : memref<1x128xf32, #tpu.memory_space<vmem>>, vector<1x128xf32>
    %6 = vector.shape_cast %5 : vector<1x128xf32> to vector<1x1x128xf32>
    %7 = vector.broadcast %6 : vector<1x1x128xf32> to vector<2x8x128xf32>
    %8 = arith.mulf %4, %7 : vector<2x8x128xf32>
    %cst_5 = arith.constant dense<0.000000e+00> : vector<2x8xf32>
    %9 = vector.multi_reduction <add>, %8, %cst_5 [2] : vector<2x8x128xf32> to vector<2x8xf32>
    %10 = tpu.iota {dimensions = array<i32: 1>} : vector<2x8xi32>
    %11 = tpu.iota {dimensions = array<i32: 0>} : vector<2x8xi32>
    %c0_i32 = arith.constant 0 : i32
    %12 = vector.broadcast %c0_i32 : i32 to vector<2x8xi32>
    %c0_i32_6 = arith.constant 0 : i32
    %13 = vector.broadcast %c0_i32_6 : i32 to vector<2x8xi32>
    %14 = arith.cmpi eq, %11, %13 : vector<2x8xi32>
    %c0_7 = arith.constant 0 : index
    %15 = memref.load %arg1[%c0_7] : memref<2xi32, #tpu.memory_space<smem>>
    %16 = vector.broadcast %15 : i32 to vector<2x8xi32>
    %17 = arith.select %14, %16, %12 : vector<2x8xi1>, vector<2x8xi32>
    %c1_i32 = arith.constant 1 : i32
    %18 = vector.broadcast %c1_i32 : i32 to vector<2x8xi32>
    %19 = arith.cmpi eq, %11, %18 : vector<2x8xi32>
    %c1 = arith.constant 1 : index
    %20 = memref.load %arg1[%c1] : memref<2xi32, #tpu.memory_space<smem>>
    %21 = vector.broadcast %20 : i32 to vector<2x8xi32>
    %22 = arith.select %19, %21, %17 : vector<2x8xi1>, vector<2x8xi32>
    %23 = arith.cmpi eq, %10, %22 : vector<2x8xi32>
    %cst_8 = arith.constant 0.000000e+00 : f32
    %24 = vector.broadcast %cst_8 : f32 to vector<2x8xf32>
    %25 = arith.select %23, %9, %24 : vector<2x8xi1>, vector<2x8xf32>
    %cst_9 = arith.constant dense<0.000000e+00> : vector<2xf32>
    %26 = vector.multi_reduction <add>, %25, %cst_9 [1] : vector<2x8xf32> to vector<2xf32>
    %27 = vector.shape_cast %26 : vector<2xf32> to vector<2x1xf32>
    %c0_10 = arith.constant 0 : index
    %c0_11 = arith.constant 0 : index
    %28 = vector.load %arg5[%c0_10, %c0_11] : memref<2x1xf32, #tpu.memory_space<vmem>>, vector<2x1xf32>
    tpu.vector_store %arg5[%c0_10, %c0_11], %27 {strides = array<i32>} : memref<2x1xf32, #tpu.memory_space<vmem>>, vector<2x1xf32>,
    return
  }
  func.func @transform_0(%arg0: i32, %arg1: memref<2xi32, #tpu.memory_space<smem>>) -> (i32, i32) {
    %c0_i32 = arith.constant 0 : i32
    %c0_i32_0 = arith.constant 0 : i32
    %c0_i32_1 = arith.constant 0 : i32
    return %c0_i32, %c0_i32_0 : i32, i32
  }
  func.func @transform_1(%arg0: i32, %arg1: memref<2xi32, #tpu.memory_space<smem>>) -> (i32, i32) {
    %c0_i32 = arith.constant 0 : i32
    %c0_i32_0 = arith.constant 0 : i32
    %c0_i32_1 = arith.constant 0 : i32
    return %c0_i32, %c0_i32_0 : i32, i32
  }
  func.func @transform_2(%arg0: i32, %arg1: memref<2xi32, #tpu.memory_space<smem>>) -> (i32, i32) {
    %c0_i32 = arith.constant 0 : i32
    %c0_i32_0 = arith.constant 0 : i32
    %c0_i32_1 = arith.constant 0 : i32
    return %c0_i32, %c0_i32_0 : i32, i32
  }
  func.func @transform_3(%arg0: i32, %arg1: memref<2xi32, #tpu.memory_space<smem>>) -> (i32, i32) {
    %c0_i32 = arith.constant 0 : i32
    %c0_i32_0 = arith.constant 0 : i32
    %c0_i32_1 = arith.constant 0 : i32
    return %c0_i32, %c0_i32_0 : i32, i32
  }
}

</mosaic_0001>

<bundles_post_ra>
// kernel: gpt_reward_forward.1
= control target key start
LH: loop header
LB: loop body
LE: loop exit
PB: predicated region body
PF: predicated region fallthrough
CT: control target
= control target key end

     0   :  { %s321_s0 = inlined_call_operand.vmem [shape: s32[2], index: 0, kind: input, shape index: {}]   ;;  %s322_s1 = inlined_call_operand.vmem [shape: bf16[16,128], index: 1, kind: input, shape index: {}]   ;;  %s323_s2 = inlined_call_operand.vmem [shape: bf16[128,128], index: 2, kind: input, shape index: {}]   ;;  %s324_s3 = inlined_call_operand.vmem [shape: f32[1,128], index: 3, kind: input, shape index: {}]   ;;  %s325_s4 = inlined_call_operand.vmem [shape: f32[2,1], index: 4, kind: output, shape index: {}]  }
   0x1   :  { %s9_s17 = sshll.u32 %s321_s0, 4  ;;  %s10_s17 = int_to_ptr.vmem [resolvable:$true] %s9_s17 }
   0x2   :  { %s243_s18 = scalar_lea.vmem %s10_s17, 16  ;;  %p248_p1 = scmp.lt.s32.totalorder %s10_s17, %s10_s17 }
   0x3   :  { %p244_p0 = scmp.ne.s32.totalorder %s10_s17, %s243_s18  ;;  %p249_p2 = scmp.lt.s32.totalorder %s243_s18, %s243_s18 }
   0x5   :  { %p250_p3 = por %p249_p2, %p248_p1 }
   0x7   :  { %p251_p4 = pnand %p250_p3, %p244_p0 }
   0x9   :  { %254 = shalt.err (!%p251_p4)  }
   0xa   :  { %s257_s19 = smov [#allocation3]  }
   0xb   :  { %12 = dma.vmem_to_smem %s10_s17, 16, %s257_s19, [#allocation2] }
   0xc   :  { %255 = dma.done.wait [#allocation2], 16 }
   0xd   :  { %256 = vsyncadd [#allocation2], 4294967280 }
   0xe   :  { %14 = sfence }
   0xf   :  { %v230_v0 = vld [vmem:[%s323_s2] sm:$0xff]   ;;  %v258_v1 = vmov 0.0   ;;  %v231_v2 = vld [vmem:[%s323_s2 + $0x8] sm:$0xff]   ;;  %vm259_vm0 = vmmov 0   ;;  %v232_v3 = vld [vmem:[%s323_s2 + $0x10] sm:$0xff]   ;;  %v150_v19 = vlaneseq  ;;  %vm173_vm3 = vcmask 1041409  }
  0x10   :  { %207 = vmatprep.subr.bf16.mxu0 %v258_v1  ;;  %223 = vmatprep.mubr.msk.bf16.mxu0 %vm259_vm0, %v258_v1  ;;  %v233_v4 = vld [vmem:[%s323_s2 + $0x18] sm:$0xff]   ;;  %v234_v5 = vld [vmem:[%s323_s2 + $0x20] sm:$0xff]   ;;  %v235_v6 = vld [vmem:[%s323_s2 + $0x28] sm:$0xff]   ;;  %vm177_vm5 = vcmask 58368   ;;  %vm181_vm6 = vcmask 1024  }
  0x11   :  { %208 = vmatpush3.bf16.msra.mxu0 %v230_v0  ;;  %v236_v7 = vld [vmem:[%s323_s2 + $0x30] sm:$0xff]   ;;  %v237_v8 = vld [vmem:[%s323_s2 + $0x38] sm:$0xff]   ;;  %v238_v9 = vld [vmem:[%s322_s1] sm:$0xff]   ;;  %s155_s2 = sld [smem:[#allocation3]]  ;;  %s197_s1 = sld [smem:[#allocation3 + $0x1]]  ;;  %v153_v20 = vshrl.u32 %v150_v19, 7 }
  0x12   :  { %209 = vmatprep.subr.bf16.mxu0 %v258_v1  ;;  %v196_v14 = vld [vmem:[%s324_s3] ss:$0 sm:$0xff]  ;;  %v151_v22 = vand.u32 127, %v150_v19 }
  0x13   :  { %vm154_vm1 = vcmp.eq.s32.totalorder %v153_v20, 0  ;;  %vm158_vm2 = vcmp.eq.s32.totalorder %v153_v20, 1 }
  0x14   :  { %v167_v26 = vsub.s32 %v151_v22, %v153_v20 }
  0x15   :  { %210 = vmatpush3.bf16.msra.mxu0 %v231_v2 }
  0x16   :  { %211 = vmatprep.subr.bf16.mxu0 %v258_v1 }
  0x17   :  { %v156_v21 = vstv %s155_s2  ;;  %v160_v24 = vstv %s197_s1 }
  0x18   :  { %v157_v23 = vsel %vm154_vm1, %v156_v21, 0 }
  0x19   :  { %212 = vmatpush3.bf16.msra.mxu0 %v232_v3  ;;  %v161_v27 = vsel %vm158_vm2, %v160_v24, %v157_v23 }
  0x1a   :  { %213 = vmatprep.subr.bf16.mxu0 %v258_v1  ;;  %vm162_vm4 = vcmp.eq.s32.totalorder %v151_v22, %v161_v27 }
  0x1d   :  { %214 = vmatpush3.bf16.msra.mxu0 %v233_v4 }
  0x1e   :  { %215 = vmatprep.subr.bf16.mxu0 %v258_v1 }
  0x21   :  { %216 = vmatpush3.bf16.msra.mxu0 %v234_v5 }
  0x22   :  { %217 = vmatprep.subr.bf16.mxu0 %v258_v1 }
  0x25   :  { %218 = vmatpush3.bf16.msra.mxu0 %v235_v6 }
  0x26   :  { %219 = vmatprep.subr.bf16.mxu0 %v258_v1 }
  0x29   :  { %220 = vmatpush3.bf16.msra.mxu0 %v236_v7 }
  0x2a   :  { %221 = vmatprep.subr.bf16.mxu0 %v258_v1 }
  0x2d   :  { %222 = vmatpush3.bf16.msra.mxu0 %v237_v8 }
  0x30   :  { %224 = vmatmul.mubr.bf16.vlgmr.msra.gmra.mrb[0].mxu0 %v238_v9 }
 0x103   :  { %v128_v10 = vpop.f32.mrb[0].mxu0 }
 0x104   :  { %239 = vtanh.f32 %v128_v10  ;;  %v225_v11 = vpop.f32.mrb[1].mxu0 }
 0x105   :  { %v131_v12 = vpop.f32.mrb[2].mxu0 }
 0x106   :  { %241 = vtanh.f32 %v131_v12  ;;  %v226_v13 = vpop.f32.mrb[3].mxu0 }
 0x10e   :  { %v240_v15 = vpop.eup %239 }
 0x10f   :  { %v144_v16 = vmul.f32 %v240_v15, %v196_v14 }
 0x110   :  { %v242_v17 = vpop.eup %241 }
 0x111   :  { %146 = vadd.xlane.f32.xlu0 %v144_v16  ;;  %v145_v18 = vmul.f32 %v242_v17, %v196_v14 }
 0x115   :  { %148 = vadd.xlane.f32.xlu0 %v145_v18 }
 0x19e   :  { %v147_v25 = vpop.xlane.xlu0 %146 }
 0x19f   :  { %v168_v29 = vrot.slane %v147_v25, %v167_v26 }
 0x1a2   :  { %v149_v28 = vpop.xlane.xlu0 %148 }
 0x1a3   :  { %v172_v30 = vrot.slane %v149_v28, %v167_v26 }
 0x1a5   :  { %v174_v31 = vsel %vm173_vm3, %v172_v30, %v168_v29 }
 0x1a6   :  { %v176_v32 = vsel %vm162_vm4, %v174_v31, 0.0 }
 0x1a7   :  { %v178_v33 = vsel %vm177_vm5, %v176_v32, 0.0 }
 0x1a8   :  { %179 = vadd.xlane.f32.xlu1 %v178_v33 }
 0x235   :  { %v180_v34 = vpop.xlane.xlu1 %179 }
 0x236   :  { %182 = vst.msk [vmem:[%s325_s4] sm:$0x3] %vm181_vm6, %v180_v34 }

</bundles_post_ra>
